<compile_context>
chip_gen: v5e
topology: v5e:2x2
jax: 0.10.0
libtpu: 0.0.40
codegen_flags: <defaults>
</compile_context>

<pallas_src>
import jax
import jax.numpy as jnp
from jax.experimental import pallas as pl
from jax.experimental.pallas import tpu as pltpu

IN_FEATURES = 28 * 28   # 784 (kept unpadded: full-dim block satisfies the (8,128) rule)
HIDDEN = 64
HIDDEN_PAD = 128
OUT = 10
OUT_PAD = 128


def dense_kernel(x_ref, w1_ref, b1_ref, w2_ref, b2_ref, o_ref):
    # Layer 1: Linear(784, 128) + ReLU.  Cast x to bf16 in-kernel (MXU-native inputs,
    # f32 accumulation); weights are already bf16 and VMEM-resident.
    x = x_ref[...].astype(jnp.bfloat16)                                   # (TM, 784)
    h = jnp.dot(x, w1_ref[...], preferred_element_type=jnp.float32)      # (TM, 128) f32
    h = jnp.maximum(h + b1_ref[...], 0.0)                                # bias + ReLU (pad stays 0)
    # Layer 2: Linear(128, 128-padded).  Padded logit columns carry bias -1e30 (f32).
    logits = jnp.dot(h.astype(jnp.bfloat16), w2_ref[...],
                     preferred_element_type=jnp.float32) + b2_ref[...]   # (TM, 128) f32
    # Numerically stable softmax over the padded lane-dense width; padded columns
    # contribute exp(-1e30 - m) == 0, so the denominator is exact.  Exact divide:
    # the kernel is HBM-bound, so this costs nothing and keeps row sums tight.
    m = jnp.max(logits, axis=-1, keepdims=True)
    e = jnp.exp(logits - m)
    denom = jnp.sum(e, axis=-1, keepdims=True)
    o_ref[...] = (e / denom).astype(o_ref.dtype)                         # bf16 store


def dense_forward(x2d, w1, b1, w2, b2, *, tm):
    """x2d: (N, 784) any float dtype, N % tm == 0.  Weights (in, out) bf16, biases (1, out) f32."""
    n, k_in = x2d.shape
    h_dim = w1.shape[1]
    out_pad = w2.shape[1]
    grid = (n // tm,)

    # VMEM budget: double-buffered x tile + double-buffered bf16 out tile + weights/biases.
    x_bytes = jnp.dtype(x2d.dtype).itemsize
    footprint = (2 * tm * k_in * x_bytes
                 + 2 * tm * out_pad * 2
                 + (k_in * h_dim + h_dim * out_pad) * 2
                 + (h_dim + out_pad) * 4)
    vmem_limit = int(min(32 << 20, max(8 << 20, footprint + (8 << 20))))

    return pl.pallas_call(
        dense_kernel,
        out_shape=jax.ShapeDtypeStruct((n, out_pad), jnp.bfloat16),
        grid_spec=pltpu.PrefetchScalarGridSpec(
            num_scalar_prefetch=0,
            grid=grid,
            in_specs=[
                pl.BlockSpec((tm, k_in), lambda i: (i, 0)),       # x tile: pipelined per step
                pl.BlockSpec((k_in, h_dim), lambda i: (0, 0)),    # w1: VMEM-resident
                pl.BlockSpec((1, h_dim), lambda i: (0, 0)),       # b1
                pl.BlockSpec((h_dim, out_pad), lambda i: (0, 0)), # w2
                pl.BlockSpec((1, out_pad), lambda i: (0, 0)),     # b2 (f32, -1e30 pad)
            ],
            out_specs=pl.BlockSpec((tm, out_pad), lambda i: (i, 0)),
        ),
        compiler_params=pltpu.CompilerParams(
            dimension_semantics=("parallel",),   # independent batch tiles (megacore on v7x)
            vmem_limit_bytes=vmem_limit,
        ),
    )(x2d, w1, b1, w2, b2)


def _round_up(x, m):
    return ((x + m - 1) // m) * m


def kaiming_normal(key, shape_out_in):
    # Matches torch.nn.init.kaiming_normal_ default (fan_in mode, a=0):
    # std = sqrt(2 / fan_in), fan_in = shape[1] for an (out, in) weight.
    fan_in = shape_out_in[1]
    std = (2.0 / fan_in) ** 0.5
    return std * jax.random.normal(key, shape_out_in, dtype=jnp.float32)


class DensePallas:
    def __init__(self, key):
        k1, k2, k3, k4 = jax.random.split(key, 4)
        # PyTorch Linear weights are (out_features, in_features).
        w1_oi = kaiming_normal(k1, (HIDDEN, IN_FEATURES))
        b1 = jax.random.normal(k2, (HIDDEN,), dtype=jnp.float32)   # nn.init.normal_
        w2_oi = kaiming_normal(k3, (OUT, HIDDEN))
        b2 = jax.random.normal(k4, (OUT,), dtype=jnp.float32)

        # Keep f32 originals for the pure-JAX reference in the self-test.
        self.ref_params = (w1_oi, b1, w2_oi, b2)

        # (in, out) layout; hidden / output feature dims zero-padded to 128 lanes.
        w1 = jnp.zeros((IN_FEATURES, HIDDEN_PAD), jnp.float32)
        w1 = w1.at[:, :HIDDEN].set(jnp.transpose(w1_oi))
        b1p = jnp.zeros((1, HIDDEN_PAD), jnp.float32)
        b1p = b1p.at[0, :HIDDEN].set(b1)

        w2 = jnp.zeros((HIDDEN_PAD, OUT_PAD), jnp.float32)
        w2 = w2.at[:HIDDEN, :OUT].set(jnp.transpose(w2_oi))
        # Padded logit columns: huge negative bias -> exp() == 0 in the softmax.
        b2p = jnp.full((1, OUT_PAD), -1e30, jnp.float32)
        b2p = b2p.at[0, :OUT].set(b2)

        self.w1 = w1.astype(jnp.bfloat16)   # MXU-native weights
        self.w2 = w2.astype(jnp.bfloat16)
        self.b1 = b1p                        # biases stay f32 (keeps -1e30 pad exact)
        self.b2 = b2p

    def __call__(self, x, *, tm_max=1024):
        # glue: view(-1, 784).  No dtype round-trip, no column padding.
        x_flat = x.reshape(-1, IN_FEATURES)
        n = x_flat.shape[0]
        # Batch tile: aim for >= ~4 grid steps so the DMA pipeline / megacore have work;
        # multiple of 8 (sublane), capped (512-1024 is on-roofline for v5e/v6e;
        # raise tm_max for very large N on v7x).
        tm = max(8, min(tm_max, _round_up(pl.cdiv(n, 4), 8)))
        n_pad = _round_up(n, tm)
        if n_pad != n:
            x_flat = jnp.pad(x_flat, ((0, n_pad - n), (0, 0)))   # rows only, cheap
        out_pad = dense_forward(x_flat, self.w1, self.b1, self.w2, self.b2, tm=tm)
        # Drop padded rows and padded logit columns.
        return out_pad[:n, :OUT]

    def reference(self, x):
        """Pure-JAX f32 forward (mirrors the PyTorch module) for correctness checks."""
        w1_oi, b1, w2_oi, b2 = self.ref_params
        xf = x.reshape(-1, IN_FEATURES).astype(jnp.float32)
        h = jnp.maximum(xf @ w1_oi.T + b1, 0.0)
        logits = h @ w2_oi.T + b2
        return jax.nn.softmax(logits, axis=-1)


if __name__ == "__main__":
    key = jax.random.PRNGKey(0)
    k_param, k_input = jax.random.split(key)

    model = DensePallas(k_param)

    # Small batch of MNIST-shaped inputs: (N, C, H, W) = (2, 1, 28, 28)
    x = jax.random.normal(k_input, (2, 1, 28, 28), dtype=jnp.float32)

    out = model(x)
    out = jax.block_until_ready(out)

    assert out.shape == (2, OUT)
    out_f32 = out.astype(jnp.float32)

    # Softmax rows: non-negative, sum to ~1 (bf16 output + bf16 matmul inputs -> loose tol).
    row_sums = jnp.sum(out_f32, axis=-1)
    assert bool(jnp.all(jnp.abs(row_sums - 1.0) < 3e-2)), row_sums
    assert bool(jnp.all(out_f32 >= 0.0))

    # Match the pure-JAX f32 reference within bf16 tolerance.
    ref = model.reference(x)
    assert bool(jnp.all(jnp.abs(out_f32 - ref) < 3e-2)), jnp.max(jnp.abs(out_f32 - ref))

    print("KERNEL_OK")
</pallas_src>

<mosaic_0001>
module attributes {stable_mosaic.version = 11 : i64} {
  func.func @dense_kernel(%arg0: i32, %arg1: memref<8x784xf32, #tpu.memory_space<vmem>>, %arg2: memref<784x128xbf16, #tpu.memory_space<vmem>>, %arg3: memref<1x128xf32, #tpu.memory_space<vmem>>, %arg4: memref<128x128xbf16, #tpu.memory_space<vmem>>, %arg5: memref<1x128xf32, #tpu.memory_space<vmem>>, %arg6: memref<8x128xbf16, #tpu.memory_space<vmem>>) attributes {dimension_semantics = [#tpu.dimension_semantics<parallel>], iteration_bounds = array<i64: 1>, scalar_prefetch = 0 : i64, scratch_operands = 0 : i64, tpu.core_type = #tpu.core_type<tc>, window_params = [{transform_indices = @transform_0, window_bounds = array<i64: 8, 784>}, {pipeline_mode = #tpu.pipeline_mode<synchronous>, transform_indices = @transform_1, window_bounds = array<i64: 784, 128>}, {pipeline_mode = #tpu.pipeline_mode<synchronous>, transform_indices = @transform_2, window_bounds = array<i64: 1, 128>}, {pipeline_mode = #tpu.pipeline_mode<synchronous>, transform_indices = @transform_3, window_bounds = array<i64: 128, 128>}, {pipeline_mode = #tpu.pipeline_mode<synchronous>, transform_indices = @transform_4, window_bounds = array<i64: 1, 128>}, {transform_indices = @transform_5, window_bounds = array<i64: 8, 128>}]} {
    %c0 = arith.constant 0 : index
    %c0_0 = arith.constant 0 : index
    %0 = vector.load %arg1[%c0, %c0_0] : memref<8x784xf32, #tpu.memory_space<vmem>>, vector<8x784xf32>
    %1 = arith.truncf %0 : vector<8x784xf32> to vector<8x784xbf16>
    %c0_1 = arith.constant 0 : index
    %c0_2 = arith.constant 0 : index
    %2 = vector.load %arg2[%c0_1, %c0_2] : memref<784x128xbf16, #tpu.memory_space<vmem>>, vector<784x128xbf16>
    %cst = arith.constant dense<0.000000e+00> : vector<8x128xf32>
    %3 = tpu.matmul %1, %2, %cst {dimension_numbers = #tpu.dot_dimension_numbers<[1], [0], [0], [1], [0, 0, 1, 1], [], []>} : vector<8x784xbf16>, vector<784x128xbf16>, vector<8x128xf32> -> vector<8x128xf32>
    %c0_3 = arith.constant 0 : index
    %c0_4 = arith.constant 0 : index
    %4 = vector.load %arg3[%c0_3, %c0_4] : memref<1x128xf32, #tpu.memory_space<vmem>>, vector<1x128xf32>
    %5 = vector.broadcast %4 : vector<1x128xf32> to vector<8x128xf32>
    %6 = arith.addf %3, %5 : vector<8x128xf32>
    %cst_5 = arith.constant 0.000000e+00 : f32
    %7 = vector.broadcast %cst_5 : f32 to vector<8x128xf32>
    %8 = arith.maximumf %6, %7 : vector<8x128xf32>
    %9 = arith.truncf %8 : vector<8x128xf32> to vector<8x128xbf16>
    %c0_6 = arith.constant 0 : index
    %c0_7 = arith.constant 0 : index
    %10 = vector.load %arg4[%c0_6, %c0_7] : memref<128x128xbf16, #tpu.memory_space<vmem>>, vector<128x128xbf16>
    %cst_8 = arith.constant dense<0.000000e+00> : vector<8x128xf32>
    %11 = tpu.matmul %9, %10, %cst_8 {dimension_numbers = #tpu.dot_dimension_numbers<[1], [0], [0], [1], [0, 0, 1, 1], [], []>} : vector<8x128xbf16>, vector<128x128xbf16>, vector<8x128xf32> -> vector<8x128xf32>
    %c0_9 = arith.constant 0 : index
    %c0_10 = arith.constant 0 : index
    %12 = vector.load %arg5[%c0_9, %c0_10] : memref<1x128xf32, #tpu.memory_space<vmem>>, vector<1x128xf32>
    %13 = vector.broadcast %12 : vector<1x128xf32> to vector<8x128xf32>
    %14 = arith.addf %11, %13 : vector<8x128xf32>
    %cst_11 = arith.constant dense<0xFF800000> : vector<8xf32>
    %15 = vector.multi_reduction <maximumf>, %14, %cst_11 [1] : vector<8x128xf32> to vector<8xf32>
    %16 = vector.shape_cast %15 : vector<8xf32> to vector<8x1xf32>
    %17 = vector.broadcast %16 : vector<8x1xf32> to vector<8x128xf32>
    %18 = arith.subf %14, %17 : vector<8x128xf32>
    %19 = math.exp %18 : vector<8x128xf32>
    %cst_12 = arith.constant dense<0.000000e+00> : vector<8xf32>
    %20 = vector.multi_reduction <add>, %19, %cst_12 [1] : vector<8x128xf32> to vector<8xf32>
    %21 = vector.shape_cast %20 : vector<8xf32> to vector<8x1xf32>
    %22 = vector.broadcast %21 : vector<8x1xf32> to vector<8x128xf32>
    %23 = arith.divf %19, %22 : vector<8x128xf32>
    %24 = arith.truncf %23 : vector<8x128xf32> to vector<8x128xbf16>
    %c0_13 = arith.constant 0 : index
    %c0_14 = arith.constant 0 : index
    %25 = vector.load %arg6[%c0_13, %c0_14] : memref<8x128xbf16, #tpu.memory_space<vmem>>, vector<8x128xbf16>
    tpu.vector_store %arg6[%c0_13, %c0_14], %24 {strides = array<i32>} : memref<8x128xbf16, #tpu.memory_space<vmem>>, vector<8x128xbf16>,
    return
  }
  func.func @transform_0(%arg0: i32) -> (i32, i32) {
    %c0_i32 = arith.constant 0 : i32
    %c0_i32_0 = arith.constant 0 : i32
    return %arg0, %c0_i32 : i32, i32
  }
  func.func @transform_1(%arg0: i32) -> (i32, i32) {
    %c0_i32 = arith.constant 0 : i32
    %c0_i32_0 = arith.constant 0 : i32
    %c0_i32_1 = arith.constant 0 : i32
    return %c0_i32, %c0_i32_0 : i32, i32
  }
  func.func @transform_2(%arg0: i32) -> (i32, i32) {
    %c0_i32 = arith.constant 0 : i32
    %c0_i32_0 = arith.constant 0 : i32
    %c0_i32_1 = arith.constant 0 : i32
    return %c0_i32, %c0_i32_0 : i32, i32
  }
  func.func @transform_3(%arg0: i32) -> (i32, i32) {
    %c0_i32 = arith.constant 0 : i32
    %c0_i32_0 = arith.constant 0 : i32
    %c0_i32_1 = arith.constant 0 : i32
    return %c0_i32, %c0_i32_0 : i32, i32
  }
  func.func @transform_4(%arg0: i32) -> (i32, i32) {
    %c0_i32 = arith.constant 0 : i32
    %c0_i32_0 = arith.constant 0 : i32
    %c0_i32_1 = arith.constant 0 : i32
    return %c0_i32, %c0_i32_0 : i32, i32
  }
  func.func @transform_5(%arg0: i32) -> (i32, i32) {
    %c0_i32 = arith.constant 0 : i32
    %c0_i32_0 = arith.constant 0 : i32
    return %arg0, %c0_i32 : i32, i32
  }
}

</mosaic_0001>

<bundles_post_ra>
// kernel: tpu_custom_call.1
= control target key start
LH: loop header
LB: loop body
LE: loop exit
PB: predicated region body
PF: predicated region fallthrough
CT: control target
= control target key end

     0   :  { %10 = vsyncpa [#allocation3], 0  ;;  %s1151_s0 = inlined_call_operand.hbm [shape: f32[8,784], index: 0, kind: input, shape index: {}]   ;;  %s1152_s1 = inlined_call_operand.hbm [shape: bf16[784,128], index: 1, kind: input, shape index: {}]   ;;  %s1153_s2 = inlined_call_operand.vmem [shape: f32[1,128], index: 2, kind: input, shape index: {}]   ;;  %s1154_s3 = inlined_call_operand.hbm [shape: bf16[128,128], index: 3, kind: input, shape index: {}]   ;;  %s1155_s4 = inlined_call_operand.vmem [shape: f32[1,128], index: 4, kind: input, shape index: {}]   ;;  %s1156_s5 = inlined_call_operand.hbm [shape: bf16[8,128], index: 5, kind: output, shape index: {}]  }
   0x1   :  { %11 = vsyncpa [#allocation6], 0  ;;  %s28_s20 = sshll.u32 %s1152_s1, 4  ;;  %s29_s20 = int_to_ptr.hbm [resolvable:$true] %s28_s20 }
   0x2   :  { %12 = vsyncpa [#allocation4], 0  ;;  %s1097_s21 = smov [#allocation5]   ;;  %s18_s25 = sshll.u32 %s1151_s0, 4  ;;  %s19_s25 = int_to_ptr.hbm [resolvable:$true] %s18_s25 }
   0x3   :  { %s30_s22 = sshll.u32 %s1097_s21, 4  ;;  %s1098_s26 = smov 64   ;;  %s31_s22 = int_to_ptr.vmem [resolvable:$true] %s30_s22 }
   0x4   :  { %s1099_s27 = smov 4   ;;  %s1100_s28 = smov [#allocation2]  }
   0x5   :  { %36 = dma.hbm_to_vmem [thread:$0]  %s29_s20, 6272, %s31_s22, [#allocation6], %s1098_s26, %s1098_s26, %s1099_s27  }
   0x6   :  { %s20_s29 = sshll.u32 %s1100_s28, 4  ;;  %s43_s7 = sshll.u32 %s1154_s3, 4  ;;  %s21_s29 = int_to_ptr.vmem [resolvable:$true] %s20_s29  ;;  %s44_s7 = int_to_ptr.hbm [resolvable:$true] %s43_s7 }
   0x7   :  { %23 = dma.hbm_to_vmem [thread:$0]  %s19_s25, 896, %s21_s29, [#allocation3]  }
   0x8   :  { %s1101_s1 = smov [#allocation7]  }
   0x9   :  { %s45_s8 = sshll.u32 %s1101_s1, 4  ;;  %s46_s8 = int_to_ptr.vmem [resolvable:$true] %s45_s8 }
   0xa   :  { %51 = dma.hbm_to_vmem [thread:$0]  %s44_s7, 1024, %s46_s8, [#allocation6], %s1098_s26, %s1098_s26, %s1099_s27  }
   0xb   :  { %1091 = dma.done.wait [#allocation3], 896  }
   0xc   :  { %1092 = vsyncadd [#allocation3], 4294966400 }
   0xd   :  { %1093 = dma.done.wait [#allocation6], 7296  }
   0xe   :  { %1094 = vsyncadd [#allocation6], 4294960000  ;;  %v933_v0 = vld [vmem:[#allocation5 + $0x38] sm:$0xff]  ;;  %v932_v3 = vld [vmem:[#allocation5 + $0x30] sm:$0xff]  ;;  %vm477_vm0 = vcmask 130048   ;;  %s686_s13 = sshll.u32 %s1156_s5, 4  ;;  %s687_s13 = int_to_ptr.hbm [resolvable:$true] %s686_s13 }
   0xf   :  { %v941_v1 = vld [vmem:[#allocation5 + $0x78] sm:$0xff]  ;;  %481 = vmatpush.bf16.msra.mxu0 %v933_v0  ;;  %v940_v4 = vld [vmem:[#allocation5 + $0x70] sm:$0xff]  ;;  %v931_v8 = vld [vmem:[#allocation5 + $0x28] sm:$0xff] }
  0x10   :  { %v949_v2 = vld [vmem:[#allocation5 + $0xb8] sm:$0xff]  ;;  %494 = vmatpush.bf16.msra.mxu1 %v941_v1  ;;  %v948_v5 = vld [vmem:[#allocation5 + $0xb0] sm:$0xff]  ;;  %v939_v9 = vld [vmem:[#allocation5 + $0x68] sm:$0xff] }
  0x11   :  { %507 = vmatpush.bf16.msra.mxu2 %v949_v2  ;;  %v957_v6 = vld [vmem:[#allocation5 + $0xf8] sm:$0xff]  ;;  %v956_v7 = vld [vmem:[#allocation5 + $0xf0] sm:$0xff]  ;;  %v947_v10 = vld [vmem:[#allocation5 + $0xa8] sm:$0xff] }
  0x12   :  { %520 = vmatpush.bf16.msra.mxu3 %v957_v6  ;;  %v955_v11 = vld [vmem:[#allocation5 + $0xe8] sm:$0xff]  ;;  %v930_v12 = vld [vmem:[#allocation5 + $0x20] sm:$0xff]  ;;  %v929_v16 = vld [vmem:[#allocation5 + $0x18] sm:$0xff] }
  0x13   :  { %482 = vmatpush.bf16.msra.mxu0 %v932_v3  ;;  %v938_v13 = vld [vmem:[#allocation5 + $0x60] sm:$0xff]  ;;  %v937_v17 = vld [vmem:[#allocation5 + $0x58] sm:$0xff]  ;;  %v928_v20 = vld [vmem:[#allocation5 + $0x10] sm:$0xff] }
  0x14   :  { %495 = vmatpush.bf16.msra.mxu1 %v940_v4  ;;  %v946_v14 = vld [vmem:[#allocation5 + $0xa0] sm:$0xff]  ;;  %v945_v18 = vld [vmem:[#allocation5 + $0x98] sm:$0xff]  ;;  %v936_v21 = vld [vmem:[#allocation5 + $0x50] sm:$0xff] }
  0x15   :  { %508 = vmatpush.bf16.msra.mxu2 %v948_v5  ;;  %v954_v15 = vld [vmem:[#allocation5 + $0xe0] sm:$0xff]  ;;  %v953_v19 = vld [vmem:[#allocation5 + $0xd8] sm:$0xff]  ;;  %v944_v22 = vld [vmem:[#allocation5 + $0x90] sm:$0xff] }
  0x16   :  { %521 = vmatpush.bf16.msra.mxu3 %v956_v7  ;;  %v952_v23 = vld [vmem:[#allocation5 + $0xd0] sm:$0xff]  ;;  %v927_v24 = vld [vmem:[#allocation5 + $0x8] sm:$0xff]  ;;  %v926_v27 = vld [vmem:[#allocation5] sm:$0xff] }
  0x17   :  { %483 = vmatpush.bf16.msra.mxu0 %v931_v8  ;;  %v935_v25 = vld [vmem:[#allocation5 + $0x48] sm:$0xff]  ;;  %v934_v29 = vld [vmem:[#allocation5 + $0x40] sm:$0xff]  ;;  %v68_v31 = vld [vmem:[#allocation2 + $0x8] sm:$0xff] }
  0x18   :  { %496 = vmatpush.bf16.msra.mxu1 %v939_v9  ;;  %v943_v26 = vld [vmem:[#allocation5 + $0x88] sm:$0xff]  ;;  %v965_v32 = vld [vmem:[#allocation5 + $0x138] sm:$0xff]  ;;  %v942_v34 = vld [vmem:[#allocation5 + $0x80] sm:$0xff]  ;;  %v75_v37 = vpack.c.bf16 %v68_v31, %v68_v31 }
  0x19   :  { %509 = vmatpush.bf16.msra.mxu2 %v947_v10  ;;  %v951_v28 = vld [vmem:[#allocation5 + $0xc8] sm:$0xff]  ;;  %v973_v33 = vld [vmem:[#allocation5 + $0x178] sm:$0xff]  ;;  %v950_v38 = vld [vmem:[#allocation5 + $0xc0] sm:$0xff] }
  0x1a   :  { %522 = vmatpush.bf16.msra.mxu3 %v955_v11  ;;  %v67_v30 = vld [vmem:[#allocation2] sm:$0xff]  ;;  %v69_v35 = vld [vmem:[#allocation2 + $0x10] sm:$0xff]  ;;  %v974_v39 = vld [vmem:[#allocation5 + $0x180] sm:$0xff] }
  0x1b   :  { %484 = vmatpush.bf16.msra.mxu0 %v930_v12  ;;  %v74_v36 = vpack.c.bf16 %v67_v30, %v67_v30  ;;  %v70_v40 = vld [vmem:[#allocation2 + $0x18] sm:$0xff]  ;;  %v964_v41 = vld [vmem:[#allocation5 + $0x130] sm:$0xff]  ;;  %v76_v43 = vpack.c.bf16 %v69_v35, %v69_v35  ;;  %v963_v45 = vld [vmem:[#allocation5 + $0x128] sm:$0xff] }
  0x1c   :  { %497 = vmatpush.bf16.msra.mxu1 %v938_v13  ;;  %v972_v42 = vld [vmem:[#allocation5 + $0x170] sm:$0xff]  ;;  %v77_v44 = vpack.c.bf16 %v70_v40, %v70_v40  ;;  %v971_v46 = vld [vmem:[#allocation5 + $0x168] sm:$0xff]  ;;  %v962_v47 = vld [vmem:[#allocation5 + $0x120] sm:$0xff] }
  0x1d   :  { %510 = vmatpush.bf16.msra.mxu2 %v946_v14  ;;  %v970_v48 = vld [vmem:[#allocation5 + $0x160] sm:$0xff]  ;;  %v961_v49 = vld [vmem:[#allocation5 + $0x118] sm:$0xff]  ;;  %v960_v52 = vld [vmem:[#allocation5 + $0x110] sm:$0xff] }
  0x1e   :  { %523 = vmatpush.bf16.msra.mxu3 %v954_v15  ;;  %v969_v50 = vld [vmem:[#allocation5 + $0x158] sm:$0xff]  ;;  %v968_v53 = vld [vmem:[#allocation5 + $0x150] sm:$0xff]  ;;  %v959_v55 = vld [vmem:[#allocation5 + $0x108] sm:$0xff] }
  0x1f   :  { %485 = vmatpush.bf16.msra.mxu0 %v929_v16  ;;  %v73_v51 = vld [vmem:[#allocation2 + $0x30] sm:$0xff]  ;;  %v967_v56 = vld [vmem:[#allocation5 + $0x148] sm:$0xff]  ;;  %v958_v57 = vld [vmem:[#allocation5 + $0x100] sm:$0xff] }
  0x20   :  { %498 = vmatpush.bf16.msra.mxu1 %v937_v17  ;;  %v80_v54 = vpack.c.bf16 %v73_v51, %v73_v51  ;;  %v966_v58 = vld [vmem:[#allocation5 + $0x140] sm:$0xff]  ;;  %v71_v59 = vld [vmem:[#allocation2 + $0x20] sm:$0xff]  ;;  %v72_v60 = vld [vmem:[#allocation2 + $0x28] sm:$0xff] }
  0x21   :  { %511 = vmatpush.bf16.msra.mxu2 %v945_v18  ;;  %v78_v61 = vpack.c.bf16 %v71_v59, %v71_v59  ;;  %v79_v62 = vpack.c.bf16 %v72_v60, %v72_v60  ;;  %v982_v63 = vld [vmem:[#allocation7 + $0x38] sm:$0xff]  ;;  %v981_v0 = vld [vmem:[#allocation7 + $0x30] sm:$0xff]  ;;  %v980_v1 = vld [vmem:[#allocation7 + $0x28] sm:$0xff] }
  0x22   :  { %524 = vmatpush.bf16.msra.mxu3 %v953_v19  ;;  %v979_v2 = vld [vmem:[#allocation7 + $0x20] sm:$0xff]  ;;  %v978_v3 = vld [vmem:[#allocation7 + $0x18] sm:$0xff]  ;;  %v977_v4 = vld [vmem:[#allocation7 + $0x10] sm:$0xff] }
  0x23   :  { %486 = vmatpush.bf16.msra.mxu0 %v928_v20  ;;  %v976_v5 = vld [vmem:[#allocation7 + $0x8] sm:$0xff]  ;;  %v975_v8 = vld [vmem:[#allocation7] sm:$0xff] }
  0x24   :  { %499 = vmatpush.bf16.msra.mxu1 %v936_v21  ;;  %v989_v13 = vld [vmem:[%s1153_s2] ss:$0 sm:$0xff] }
  0x25   :  { %512 = vmatpush.bf16.msra.mxu2 %v944_v22  ;;  %v990_v31 = vld [vmem:[%s1155_s4] ss:$0 sm:$0xff]  ;;  %s1102_s4 = smov [#allocation8]  }
  0x26   :  { %525 = vmatpush.bf16.msra.mxu3 %v952_v23  ;;  %s684_s10 = sshll.u32 %s1102_s4, 4  ;;  %s685_s10 = int_to_ptr.vmem [resolvable:$true] %s684_s10 }
  0x27   :  { %487 = vmatpush.bf16.msra.mxu0 %v927_v24 }
  0x28   :  { %500 = vmatpush.bf16.msra.mxu1 %v935_v25 }
  0x29   :  { %513 = vmatpush.bf16.msra.mxu2 %v943_v26 }
  0x2a   :  { %526 = vmatpush.bf16.msra.mxu3 %v951_v28 }
  0x2b   :  { %488 = vmatpush.bf16.msra.mxu0 %v926_v27 }
  0x2c   :  { %501 = vmatpush.bf16.msra.mxu1 %v934_v29 }
  0x2d   :  { %514 = vmatpush.bf16.msra.mxu2 %v942_v34 }
  0x2e   :  { %489 = vmatmul.bf16.vlgmr.msra.gmra.mxu0 %v74_v36  ;;  %527 = vmatpush.bf16.msra.mxu3 %v950_v38 }
  0x2f   :  { %533 = vmatpush.bf16.msrb.mxu0 %v965_v32  ;;  %502 = vmatmul.bf16.vlgmr.msra.gmra.mxu1 %v75_v37 }
  0x30   :  { %546 = vmatpush.bf16.msrb.mxu1 %v973_v33  ;;  %515 = vmatmul.bf16.vlgmr.msra.gmra.mxu2 %v76_v43 }
  0x31   :  { %566 = vmatpush.bf16.msrb.mxu2 %v974_v39  ;;  %528 = vmatmul.bf16.vlgmr.msra.gmra.mxu3 %v77_v44 }
  0x32   :  { %642 = vmatpush.bf16.msrb.mxu3 %v982_v63 }
  0x33   :  { %534 = vmatpush.bf16.msrb.mxu0 %v964_v41 }
  0x34   :  { %547 = vmatpush.bf16.msrb.mxu1 %v972_v42 }
  0x36   :  { %643 = vmatpush.bf16.msrb.mxu3 %v981_v0 }
  0x37   :  { %535 = vmatpush.bf16.msrb.mxu0 %v963_v45 }
  0x38   :  { %548 = vmatpush.bf16.msrb.mxu1 %v971_v46 }
  0x3a   :  { %644 = vmatpush.bf16.msrb.mxu3 %v980_v1 }
  0x3b   :  { %536 = vmatpush.bf16.msrb.mxu0 %v962_v47 }
  0x3c   :  { %549 = vmatpush.bf16.msrb.mxu1 %v970_v48 }
  0x3e   :  { %645 = vmatpush.bf16.msrb.mxu3 %v979_v2 }
  0x3f   :  { %537 = vmatpush.bf16.msrb.mxu0 %v961_v49 }
  0x40   :  { %550 = vmatpush.bf16.msrb.mxu1 %v969_v50  ;;  %893 = vmatmul.msk.bf16.vlgmr.msrb.gmra.mxu2 %vm477_vm0, %v80_v54 }
  0x42   :  { %646 = vmatpush.bf16.msrb.mxu3 %v978_v3 }
  0x43   :  { %538 = vmatpush.bf16.msrb.mxu0 %v960_v52 }
  0x44   :  { %551 = vmatpush.bf16.msrb.mxu1 %v968_v53 }
  0x46   :  { %647 = vmatpush.bf16.msrb.mxu3 %v977_v4 }
  0x47   :  { %539 = vmatpush.bf16.msrb.mxu0 %v959_v55 }
  0x48   :  { %552 = vmatpush.bf16.msrb.mxu1 %v967_v56 }
  0x4a   :  { %648 = vmatpush.bf16.msrb.mxu3 %v976_v5 }
  0x4b   :  { %540 = vmatpush.bf16.msrb.mxu0 %v958_v57 }
  0x4c   :  { %553 = vmatpush.bf16.msrb.mxu1 %v966_v58 }
  0x4e   :  { %541 = vmatmul.bf16.vlgmr.msrb.gmra.mxu0 %v78_v61  ;;  %649 = vmatpush.bf16.msrb.mxu3 %v975_v8 }
  0x4f   :  { %554 = vmatmul.bf16.vlgmr.msrb.gmra.mxu1 %v79_v62 }
  0xab   :  { %v490_v6 = vpop.f32.mrf.mxu0 }
  0xac   :  { %v503_v7 = vpop.f32.mrf.mxu1  ;;  %v491_v14 = vadd.f32 %v989_v13, %v490_v6 }
  0xae   :  { %v504_v17 = vadd.f32 %v503_v7, %v491_v14 }
  0xb3   :  { %v492_v9 = vpop.f32.mrf.mxu0  ;;  %v516_v11 = vpop.f32.mrf.mxu2 }
  0xb4   :  { %v505_v10 = vpop.f32.mrf.mxu1  ;;  %v529_v12 = vpop.f32.mrf.mxu3  ;;  %v517_v18 = vadd.f32 %v516_v11, %v504_v17 }
  0xb6   :  { %v530_v20 = vadd.f32 %v529_v12, %v517_v18 }
  0xbb   :  { %v518_v15 = vpop.f32.mrf.mxu2 }
  0xbc   :  { %v531_v16 = vpop.f32.mrf.mxu3 }
  0xc3   :  { %v568_v19 = vpop.f32.mrf.mxu2 }
  0xcb   :  { %v542_v21 = vpop.f32.mrf.mxu0  ;;  %v570_v25 = vpop.f32.mrf.mxu2 }
  0xcc   :  { %v555_v22 = vpop.f32.mrf.mxu1  ;;  %v543_v23 = vadd.f32 %v542_v21, %v530_v20 }
  0xce   :  { %v556_v24 = vadd.f32 %v555_v22, %v543_v23 }
  0xd0   :  { %v569_v26 = vadd.f32 %v568_v19, %v556_v24 }
  0xd2   :  { %v572_v27 = vmax.f32 %v569_v26, 0.0 }
  0xd3   :  { %v544_v28 = vpop.f32.mrf.mxu0 }
  0xd4   :  { %v557_v29 = vpop.f32.mrf.mxu1  ;;  %v573_v30 = vpack.c.bf16 %v572_v27, %v572_v27 }
  0xd6   :  { %650 = vmatmul.bf16.vlgmr.msrb.gmra.mxu3 %v573_v30 }
 0x159   :  { %v651_v32 = vpop.f32.mrf.mxu3 }
 0x15a   :  { %v652_v33 = vadd.f32 %v990_v31, %v651_v32 }
 0x15c   :  { %655 = vmax.xlane.f32.xlu0 %v652_v33 }
 0x161   :  { %v653_v34 = vpop.f32.mrf.mxu3 }
 0x1cf   :  { %v656_v35 = vpop.xlane.xlu0 %655 }
 0x1d0   :  { %v657_v36 = vsub.f32 %v652_v33, %v656_v35 }
 0x1d2   :  { %v658_v37 = vmul.f32 1.442695, %v657_v36 }
 0x1d4   :  { %991 = vpow2.f32 %v658_v37 }
 0x1da   :  { %v992_v38 = vpop.eup %991 }
 0x1db   :  { %660 = vadd.xlane.f32.xlu0 %v992_v38 }
 0x24e   :  { %v661_v39 = vpop.xlane.xlu0 %660 }
 0x24f   :  { %993 = vrcp.f32 %v661_v39  ;;  %v673_v43 = vand.u32 2147483648, %v661_v39  ;;  %v671_v45 = vand.u32 2147483647, %v661_v39  ;;  %vm667_vm2 = vweird.f32 %v661_v39 }
 0x251   :  { %v674_v47 = vor.u32 1.1754944e-38, %v673_v43  ;;  %vm672_vm4 = vcmp.eq.f32.partialorder %v671_v45, 8.507059e+37 }
 0x255   :  { %v994_v40 = vpop.eup %993 }
 0x256   :  { %v663_v41 = vmul.f32 %v994_v40, %v661_v39  ;;  %vm668_vm1 = vweird.f32 %v994_v40 }
 0x257   :  { %vm669_vm3 = vmor %vm667_vm2, %vm668_vm1 }
 0x258   :  { %v664_v42 = vsub.f32 1.0, %v663_v41 }
 0x25a   :  { %v665_v44 = vmul.f32 %v994_v40, %v664_v42 }
 0x25c   :  { %v666_v46 = vadd.f32 %v994_v40, %v665_v44 }
 0x25e   :  { %v670_v48 = vsel %vm669_vm3, %v994_v40, %v666_v46 }
 0x25f   :  { %v675_v49 = vsel %vm672_vm4, %v674_v47, %v670_v48 }
 0x260   :  { %v676_v50 = vmul.f32 %v992_v38, %v675_v49 }
 0x262   :  { %v677_v51 = vpack.c.bf16 %v676_v50, %v676_v50 }
 0x264   :  { %678 = vst [vmem:[#allocation8] sm:$0xf] %v677_v51 }
 0x265   :  { %689 = dma.vmem_to_hbm [thread:$0]  %s685_s10, 64, %s687_s13, [#allocation4]  }
 0x266   :  { %1095 = dma.done.wait [#allocation4], 64  }
 0x267   :  { %1096 = vsyncadd [#allocation4], 4294967232 }
 0x268   :  { %694 = vsyncpa [#allocation3], 1 }
 0x269   :  { %695 = vsyncpa [#allocation6], 1 }
 0x26a   :  { %696 = vsyncpa [#allocation4], 1 }

</bundles_post_ra>
